<compile_context>
chip_gen: v5e
topology: v5e:2x2
jax: 0.10.0
libtpu: 0.0.40
codegen_flags: <defaults>
</compile_context>

<pallas_src>
import functools

import jax
import jax.numpy as jnp
from jax.experimental import pallas as pl
from jax.experimental.pallas import tpu as pltpu


def _swiglu_mlp_kernel(x_ref, wgu_ref, wd_ref, o_ref, acc_ref, *, tf):
    """One grid step: (tm, D) token tile through one F-tile of the SwiGLU MLP.

    x_ref  : (tm, D)       activation tile (constant across the F axis)
    wgu_ref: (D, 2*tf)     fused [gate_tile | up_tile] weight slab
    wd_ref : (tf, D)       down_proj weight tile
    o_ref  : (tm, D)       output tile (written only at the last F step)
    acc_ref: (tm, D) f32   VMEM accumulator for the down_proj reduction over F
    """
    j = pl.program_id(1)

    @pl.when(j == 0)
    def _():
        acc_ref[...] = jnp.zeros_like(acc_ref)

    # Cast activations to the streamed weight dtype (bf16 by default) so the MXU runs at
    # bf16 rate instead of silently promoting the whole matmul to f32.
    x = x_ref[...].astype(wgu_ref.dtype)

    # Single fused MXU push over the concatenated [gate | up] weight tile.
    gu = jnp.dot(x, wgu_ref[...], preferred_element_type=jnp.float32)  # (tm, 2*tf) f32
    gate = gu[:, :tf]
    up = gu[:, tf:]
    hidden = (gate * jax.nn.sigmoid(gate)) * up  # SiLU(gate) * up, f32 on VPU/EUP

    acc_ref[...] += jnp.dot(hidden.astype(wd_ref.dtype), wd_ref[...],
                            preferred_element_type=jnp.float32)

    @pl.when(j == pl.num_programs(1) - 1)
    def _():
        o_ref[...] = acc_ref[...].astype(o_ref.dtype)


def _round_up(x, m):
    return ((x + m - 1) // m) * m


def _largest_aligned_divisor(full, requested, align=128):
    """Largest multiple of `align` that divides `full` and is <= requested (else `full`)."""
    if full <= requested:
        return full
    t = (requested // align) * align
    while t >= align:
        if full % t == 0:
            return t
        t -= align
    return full


def _vmem_capacity_bytes():
    """Per-core VMEM capacity; conservative 128 MiB fallback if the query is unavailable."""
    try:
        cap = int(pltpu.get_tpu_info().vmem_capacity_bytes)
        if cap > 0:
            return cap
    except Exception:
        pass
    return 128 * 2 ** 20


def prepare_qwen2_5_vl_mlp_weights(w_gate, w_up, w_down, *, tf=512, dtype=jnp.bfloat16):
    """ONE-TIME weight prep (call outside the per-token hot path).

    w_gate, w_up : (F, D)  PyTorch nn.Linear (out_features, in_features) layout
    w_down       : (D, F)

    Returns (w_gu, w_d, tf) where
      w_gu: (D, 2*F), last dim ordered [gate_0 | up_0 | gate_1 | up_1 | ...] per tf-tile
      w_d : (F, D)
      tf  : the actual F tile size (multiple of 128, divides F)
    """
    ffn, dim = w_gate.shape
    assert w_up.shape == (ffn, dim) and w_down.shape == (dim, ffn)
    tf = _largest_aligned_divisor(ffn, tf, 128)
    n_f = ffn // tf
    if dtype is not None:
        # bf16 by default: halves weight HBM traffic and VMEM footprint, bf16 MXU rate.
        w_gate = w_gate.astype(dtype)
        w_up = w_up.astype(dtype)
        w_down = w_down.astype(dtype)
    wg_t = w_gate.T.reshape(dim, n_f, tf)   # (D, n_f, tf)
    wu_t = w_up.T.reshape(dim, n_f, tf)     # (D, n_f, tf)
    w_gu = jnp.concatenate([wg_t, wu_t], axis=2).reshape(dim, 2 * ffn)
    w_d = w_down.T                          # (F, D)
    return w_gu, w_d, tf


@functools.partial(jax.jit, static_argnames=("tm", "tf"))
def qwen2_5_vl_mlp(x, w_gu, w_d, *, tm=1024, tf=512):
    """x: [..., D]; (w_gu, w_d, tf) from prepare_qwen2_5_vl_mlp_weights. Returns [..., D]."""
    orig_shape = x.shape
    dim = orig_shape[-1]
    ffn = w_d.shape[0]
    assert w_gu.shape == (dim, 2 * ffn), "w_gu must come from prepare_qwen2_5_vl_mlp_weights"
    assert ffn % tf == 0, "tf must divide the intermediate size (use prepare()'s returned tf)"

    x2d = x.reshape(-1, dim)
    m = x2d.shape[0]

    a_bytes = jnp.dtype(x.dtype).itemsize
    w_bytes = jnp.dtype(w_gu.dtype).itemsize
    sub = max(8, 32 // a_bytes)  # sublane multiple: 8 (f32), 16 (bf16), 32 (int8/fp8)

    vmem_cap = _vmem_capacity_bytes()
    budget = max(vmem_cap - 8 * 2 ** 20, 16 * 2 ** 20)  # leave ~8 MiB headroom

    def est(tm_):
        return (2 * tm_ * dim * a_bytes        # x tiles (double-buffered)
                + 2 * dim * 2 * tf * w_bytes   # fused [gate|up] weight tiles
                + 2 * tf * dim * w_bytes       # down_proj weight tiles
                + 2 * tm_ * dim * a_bytes      # output tiles
                + tm_ * dim * 4                # f32 accumulator scratch
                + tm_ * dim * w_bytes          # x cast to weight dtype
                + tm_ * 2 * tf * 4             # f32 gu intermediate
                + tm_ * tf * 4                 # f32 hidden intermediate
                + tm_ * tf * w_bytes)          # hidden cast to weight dtype

    # Token tile: MXU-filling for prefill; dtype-aware sublane-rounded for tiny decode
    # batches; halved until the resident set fits this generation's VMEM (v7x: 64 MiB).
    tm_eff = _round_up(min(tm, _round_up(m, sub)), sub)
    while est(tm_eff) > budget and tm_eff > sub:
        tm_eff = max(sub, _round_up(tm_eff // 2, sub))

    n_m = pl.cdiv(m, tm_eff)   # partial last M tile handled by Pallas (masked store)
    n_f = ffn // tf

    vmem_limit = int(min(budget, max(2 * est(tm_eff), 32 * 2 ** 20)))

    kernel = functools.partial(_swiglu_mlp_kernel, tf=tf)

    out2d = pl.pallas_call(
        kernel,
        out_shape=jax.ShapeDtypeStruct((m, dim), x.dtype),
        grid_spec=pltpu.PrefetchScalarGridSpec(
            num_scalar_prefetch=0,
            grid=(n_m, n_f),  # F (reduction) axis last
            in_specs=[
                pl.BlockSpec((tm_eff, dim), lambda i, j: (i, 0)),   # x tile
                pl.BlockSpec((dim, 2 * tf), lambda i, j: (0, j)),   # fused gate|up tile
                pl.BlockSpec((tf, dim), lambda i, j: (j, 0)),       # down_proj tile
            ],
            out_specs=pl.BlockSpec((tm_eff, dim), lambda i, j: (i, 0)),
            scratch_shapes=[pltpu.VMEM((tm_eff, dim), jnp.float32)],
        ),
        compiler_params=pltpu.CompilerParams(
            dimension_semantics=("parallel", "arbitrary"),
            vmem_limit_bytes=vmem_limit,
        ),
    )(x2d, w_gu, w_d)

    return out2d.reshape(orig_shape)


def _reference_mlp(x, w_gate, w_up, w_down):
    """Pure-JAX f32 reference matching the PyTorch module semantics exactly."""
    gate = x @ w_gate.T
    up = x @ w_up.T
    return (jax.nn.silu(gate) * up) @ w_down.T


def _reference_mlp_bf16(x, w_gate, w_up, w_down):
    """Reference that mimics the kernel's default bf16 weight-streaming numerics."""
    xb = x.astype(jnp.bfloat16)
    gate = jnp.dot(xb, w_gate.astype(jnp.bfloat16).T, preferred_element_type=jnp.float32)
    up = jnp.dot(xb, w_up.astype(jnp.bfloat16).T, preferred_element_type=jnp.float32)
    hidden = (jax.nn.silu(gate) * up).astype(jnp.bfloat16)
    out = jnp.dot(hidden, w_down.astype(jnp.bfloat16).T, preferred_element_type=jnp.float32)
    return out.astype(x.dtype)


if __name__ == "__main__":
    # Small shapes consistent with the module (dim -> hidden_size, ffn -> intermediate_size).
    dim, ffn_dim = 256, 512

    key = jax.random.PRNGKey(0)
    k_x, k_g, k_u, k_d, k_x2, k_x3 = jax.random.split(key, 6)

    # PyTorch nn.Linear weight layout: (out_features, in_features)
    w_gate = jax.random.normal(k_g, (ffn_dim, dim), dtype=jnp.float32) * 0.02
    w_up = jax.random.normal(k_u, (ffn_dim, dim), dtype=jnp.float32) * 0.02
    w_down = jax.random.normal(k_d, (dim, ffn_dim), dtype=jnp.float32) * 0.02

    ok = True

    # --- f32 weight path (tight tolerance); tf=256 -> 2 F-tiles, exercises accumulation ---
    w_gu32, w_d32, tf32 = prepare_qwen2_5_vl_mlp_weights(
        w_gate, w_up, w_down, tf=256, dtype=jnp.float32)

    # Case 1: batch=2, seq=8 (divisible token count).
    x1 = jax.random.normal(k_x, (2, 8, dim), dtype=jnp.float32)
    out1 = jax.block_until_ready(qwen2_5_vl_mlp(x1, w_gu32, w_d32, tf=tf32))
    ref1 = _reference_mlp(x1, w_gate, w_up, w_down)
    ok &= out1.shape == x1.shape
    ok &= bool(jnp.allclose(out1, ref1, atol=2e-3, rtol=2e-3))

    # Case 2: batch=1, seq=5 (non-divisible -> partial last M tile, no pad round trip).
    x2 = jax.random.normal(k_x2, (1, 5, dim), dtype=jnp.float32)
    out2 = jax.block_until_ready(qwen2_5_vl_mlp(x2, w_gu32, w_d32, tf=tf32))
    ref2 = _reference_mlp(x2, w_gate, w_up, w_down)
    ok &= out2.shape == x2.shape
    ok &= bool(jnp.allclose(out2, ref2, atol=2e-3, rtol=2e-3))

    # --- default bf16 weight-streaming path (looser tolerance, mimicking reference) ---
    w_gu16, w_d16, tf16 = prepare_qwen2_5_vl_mlp_weights(w_gate, w_up, w_down, tf=256)
    x3 = jax.random.normal(k_x3, (2, 8, dim), dtype=jnp.float32)
    out3 = jax.block_until_ready(qwen2_5_vl_mlp(x3, w_gu16, w_d16, tf=tf16))
    ref3 = _reference_mlp_bf16(x3, w_gate, w_up, w_down)
    ok &= out3.shape == x3.shape
    ok &= bool(jnp.allclose(out3, ref3, atol=2e-2, rtol=2e-2))

    if not ok:
        err1 = float(jnp.max(jnp.abs(out1 - ref1)))
        err2 = float(jnp.max(jnp.abs(out2 - ref2)))
        err3 = float(jnp.max(jnp.abs(out3 - ref3)))
        raise AssertionError(
            f"mismatch vs reference: max abs err case1={err1:.3e} case2={err2:.3e} "
            f"case3(bf16)={err3:.3e}")

    print("KERNEL_OK")
</pallas_src>

<mosaic_0001>
module attributes {stable_mosaic.version = 11 : i64} {
  func.func @_swiglu_mlp_kernel(%arg0: i32, %arg1: i32, %arg2: memref<16x256xf32, #tpu.memory_space<vmem>>, %arg3: memref<256x512xf32, #tpu.memory_space<vmem>>, %arg4: memref<256x256xf32, #tpu.memory_space<vmem>>, %arg5: memref<16x256xf32, #tpu.memory_space<vmem>>, %arg6: memref<16x256xf32, #tpu.memory_space<vmem>>) attributes {dimension_semantics = [#tpu.dimension_semantics<parallel>, #tpu.dimension_semantics<arbitrary>], iteration_bounds = array<i64: 1, 2>, scalar_prefetch = 0 : i64, scratch_operands = 1 : i64, tpu.core_type = #tpu.core_type<tc>, window_params = [{transform_indices = @transform_0, window_bounds = array<i64: 16, 256>}, {transform_indices = @transform_1, window_bounds = array<i64: 256, 512>}, {transform_indices = @transform_2, window_bounds = array<i64: 256, 256>}, {transform_indices = @transform_3, window_bounds = array<i64: 16, 256>}]} {
    %c0_i32 = arith.constant 0 : i32
    %0 = arith.cmpi eq, %arg1, %c0_i32 : i32
    %1 = arith.extui %0 : i1 to i32
    %c0_i32_0 = arith.constant 0 : i32
    %2 = arith.cmpi ne, %1, %c0_i32_0 : i32
    scf.if %2 {
      %cst_13 = arith.constant 0.000000e+00 : f32
      %23 = vector.broadcast %cst_13 : f32 to vector<16x256xf32>
      %c0_14 = arith.constant 0 : index
      %c0_15 = arith.constant 0 : index
      %24 = vector.load %arg6[%c0_14, %c0_15] : memref<16x256xf32, #tpu.memory_space<vmem>>, vector<16x256xf32>
      tpu.vector_store %arg6[%c0_14, %c0_15], %23 {strides = array<i32>} : memref<16x256xf32, #tpu.memory_space<vmem>>, vector<16x256xf32>,
    } else {
    }
    %c0 = arith.constant 0 : index
    %c0_1 = arith.constant 0 : index
    %3 = vector.load %arg2[%c0, %c0_1] : memref<16x256xf32, #tpu.memory_space<vmem>>, vector<16x256xf32>
    %c0_2 = arith.constant 0 : index
    %c0_3 = arith.constant 0 : index
    %4 = vector.load %arg3[%c0_2, %c0_3] : memref<256x512xf32, #tpu.memory_space<vmem>>, vector<256x512xf32>
    %cst = arith.constant dense<0.000000e+00> : vector<16x512xf32>
    %5 = tpu.matmul %3, %4, %cst {dimension_numbers = #tpu.dot_dimension_numbers<[1], [0], [0], [1], [0, 0, 1, 1], [], []>} : vector<16x256xf32>, vector<256x512xf32>, vector<16x512xf32> -> vector<16x512xf32>
    %6 = vector.extract_strided_slice %5 {offsets = [0, 0], sizes = [16, 256], strides = [1, 1]} : vector<16x512xf32> to vector<16x256xf32>
    %7 = vector.extract_strided_slice %5 {offsets = [0, 256], sizes = [16, 256], strides = [1, 1]} : vector<16x512xf32> to vector<16x256xf32>
    %8 = arith.negf %6 : vector<16x256xf32>
    %9 = math.exp %8 : vector<16x256xf32>
    %cst_4 = arith.constant 1.000000e+00 : f32
    %10 = vector.broadcast %cst_4 : f32 to vector<16x256xf32>
    %11 = arith.addf %10, %9 : vector<16x256xf32>
    %12 = arith.divf %10, %11 : vector<16x256xf32>
    %13 = arith.mulf %6, %12 : vector<16x256xf32>
    %14 = arith.mulf %13, %7 : vector<16x256xf32>
    %c0_5 = arith.constant 0 : index
    %c0_6 = arith.constant 0 : index
    %15 = vector.load %arg6[%c0_5, %c0_6] : memref<16x256xf32, #tpu.memory_space<vmem>>, vector<16x256xf32>
    %c0_7 = arith.constant 0 : index
    %c0_8 = arith.constant 0 : index
    %16 = vector.load %arg4[%c0_7, %c0_8] : memref<256x256xf32, #tpu.memory_space<vmem>>, vector<256x256xf32>
    %cst_9 = arith.constant dense<0.000000e+00> : vector<16x256xf32>
    %17 = tpu.matmul %14, %16, %cst_9 {dimension_numbers = #tpu.dot_dimension_numbers<[1], [0], [0], [1], [0, 0, 1, 1], [], []>} : vector<16x256xf32>, vector<256x256xf32>, vector<16x256xf32> -> vector<16x256xf32>
    %18 = arith.addf %15, %17 : vector<16x256xf32>
    %c0_10 = arith.constant 0 : index
    %c0_11 = arith.constant 0 : index
    %19 = vector.load %arg6[%c0_10, %c0_11] : memref<16x256xf32, #tpu.memory_space<vmem>>, vector<16x256xf32>
    tpu.vector_store %arg6[%c0_10, %c0_11], %18 {strides = array<i32>} : memref<16x256xf32, #tpu.memory_space<vmem>>, vector<16x256xf32>,
    %c1_i32 = arith.constant 1 : i32
    %20 = arith.cmpi eq, %arg1, %c1_i32 : i32
    %21 = arith.extui %20 : i1 to i32
    %c0_i32_12 = arith.constant 0 : i32
    %22 = arith.cmpi ne, %21, %c0_i32_12 : i32
    scf.if %22 {
      %c0_13 = arith.constant 0 : index
      %c0_14 = arith.constant 0 : index
      %23 = vector.load %arg6[%c0_13, %c0_14] : memref<16x256xf32, #tpu.memory_space<vmem>>, vector<16x256xf32>
      %c0_15 = arith.constant 0 : index
      %c0_16 = arith.constant 0 : index
      %24 = vector.load %arg5[%c0_15, %c0_16] : memref<16x256xf32, #tpu.memory_space<vmem>>, vector<16x256xf32>
      tpu.vector_store %arg5[%c0_15, %c0_16], %23 {strides = array<i32>} : memref<16x256xf32, #tpu.memory_space<vmem>>, vector<16x256xf32>,
    } else {
    }
    return
  }
  func.func @transform_0(%arg0: i32, %arg1: i32) -> (i32, i32) {
    %c0_i32 = arith.constant 0 : i32
    %c0_i32_0 = arith.constant 0 : i32
    return %arg0, %c0_i32 : i32, i32
  }
  func.func @transform_1(%arg0: i32, %arg1: i32) -> (i32, i32) {
    %c0_i32 = arith.constant 0 : i32
    %c0_i32_0 = arith.constant 0 : i32
    return %c0_i32, %arg1 : i32, i32
  }
  func.func @transform_2(%arg0: i32, %arg1: i32) -> (i32, i32) {
    %c0_i32 = arith.constant 0 : i32
    %c0_i32_0 = arith.constant 0 : i32
    return %arg1, %c0_i32 : i32, i32
  }
  func.func @transform_3(%arg0: i32, %arg1: i32) -> (i32, i32) {
    %c0_i32 = arith.constant 0 : i32
    %c0_i32_0 = arith.constant 0 : i32
    return %arg0, %c0_i32 : i32, i32
  }
}

</mosaic_0001>

<bundles_post_ra>
// kernel: qwen2_5_vl_mlp.1
= control target key start
LH: loop header
LB: loop body
LE: loop exit
PB: predicated region body
PF: predicated region fallthrough
CT: control target
= control target key end

     0   :  { %8 = vsyncpa [#allocation4], 0  ;;  %s1679_s0 = inlined_call_operand.hbm [shape: f32[16,256], index: 0, kind: input, shape index: {}]   ;;  %s1680_s1 = inlined_call_operand.hbm [shape: f32[256,1024], index: 1, kind: input, shape index: {}]   ;;  %s1681_s2 = inlined_call_operand.hbm [shape: f32[512,256], index: 2, kind: input, shape index: {}]   ;;  %s1682_s3 = inlined_call_operand.hbm [shape: f32[16,256], index: 3, kind: output, shape index: {}]  }
   0x1   :  { %9 = vsyncpa [#allocation7], 0 }
   0x2   :  { %11 = vsyncpa [#allocation7 + $0x1], 0 }
   0x3   :  { %12 = vsyncpa [#allocation5], 0  ;;  %s1302_s12 = smov 0   ;;  %s1304_s13 = smov 0  }
   0x4   :  { %s1306_s14 = smov 0   ;;  %s1308_s15 = smov 0  }
   0x5   :  { %s1310_s16 = smov 0   ;;  %s1312_s17 = smov 0  }
   0x6 LB: > { %s27_s18 = sadd.s32 1, %s1266_s16  ;;  %s63_s19 = sadd.s32 1, %s1258_s14  ;;  %s1270_s17 = sphi %s1312_s17, %s18_s17   ;;  %s1266_s16 = sphi %s1310_s16, %s1693_s16   ;;  %s1262_s15 = sphi %s1308_s15, %s1692_s15   ;;  %s1258_s14 = sphi %s1306_s14, %s1691_s14   ;;  %s1254_s13 = sphi %s1304_s13, %s1690_s13   ;;  %s1250_s12 = sphi %s1302_s12, %s1689_s12  }
   0x7   : > { %p28_p0 = scmp.ge.s32.totalorder %s27_s18, 2  ;;  %p70_p1 = scmp.ne.s32.totalorder %s1258_s14, %s1254_s13 }
   0x8   : > { %p71_p2 = scmp.eq.s32.totalorder %s1270_s17, 0  ;;  %p1016_p4 = scmp.lt.s32.totalorder %s1270_s17, 2 }
   0x9   : > { %s1695_s18 = smov (%p28_p0, %s27_s18), 0  ;;  %s170_s22 = sand.u32 1, %s1270_s17  }
   0xa   : > { %p1339_p3 = por %p71_p2, %p70_p1  ;;  %s60_s21 = ssub.s32 %s1266_s16, %s1695_s18 }
   0xb   : > { %p61_p5 = scmp.eq.s32.totalorder %s60_s21, 0  ;;  %s172_s23 = sand.u32 1, %s1258_s14  }
   0xc   : > { %s989_s24 = sshll.u32 %s1266_s16, 5  ;;  %s968_s26 = sshll.u32 %s172_s23, 10 }
   0xd   : > { %s1350_s25 = scalar_select %p61_p5, %s1258_s14, %s63_s19  }
   0xe   : > { %s179_s29 = scalar_lea.hbm %s1680_s1, %s989_s24  ;;  %s174_s4 = scalar_lea.vmem [#allocation6], %s968_s26 }
   0xf   : > { %s180_s30 = sshll.u32 %s179_s29, 4  ;;  %s182_s5 = sshll.u32 %s174_s4, 4  ;;  %s181_s30 = int_to_ptr.hbm [resolvable:$true] %s180_s30  ;;  %s183_s5 = int_to_ptr.vmem [resolvable:$true] %s182_s5 }
  0x10   : > { %p1359_p6 = pnand %p1016_p4, %p1339_p3  ;;  %s1363_s7 = scalar_lea.sflag [#allocation7], %s170_s22 }
  0x11   : > { %s1272_s8 = smov 1024   ;;  %s1273_s9 = smov 512  }
  0x12   : > { %s1274_s10 = smov 32   ;;  %s1369_s11 = sadd.s32 4294967295, %s1270_s17  }
  0x13   : > { %1011 = dma.hbm_to_vmem [thread:$0]  (!%p1359_p6), %s181_s30, 16384, %s183_s5, %s1363_s7, %s1272_s8, %s1273_s9, %s1274_s10  }
  0x14   : > { %p76_p7 = scmp.ne.s32.totalorder %s1254_s13, %s1250_s12  ;;  %p77_p8 = scmp.eq.s32.totalorder %s1369_s11, 0 }
  0x15   : > { %p965_p9 = scmp.ge.s32.totalorder %s1270_s17, 1  ;;  %p139_p10 = scmp.lt.s32.totalorder %s1270_s17, 3 }
  0x16   : > { %p1378_p11 = por %p77_p8, %p76_p7  ;;  %s154_s22 = sshll.u32 %s1679_s0, 4  ;;  %s155_s22 = int_to_ptr.hbm [resolvable:$true] %s154_s22 }
  0x17   : > { %p1385_p12 = pnand %p965_p9, %p139_p10  ;;  %s1275_s12 = smov [#allocation3]  }
  0x18   : > { %s156_s26 = sshll.u32 %s1275_s12, 4  ;;  %s971_s27 = sshll.u32 %s172_s23, 9  ;;  %s157_s26 = int_to_ptr.vmem [resolvable:$true] %s156_s26 }
  0x19   : > { %p1004_p13 = pneg %p1385_p12  ;;  %s991_s28 = sshll.u32 %s1266_s16, 9 }
  0x1a   : > { %s202_s4 = scalar_lea.hbm %s1681_s2, %s991_s28  ;;  %s1276_s5 = smov 256  }
  0x1b   : > { %p1005_p0 = pnand %p1004_p13, %p77_p8  ;;  %s1277_s8 = smov 16  }
  0x1c   : > { %s203_s9 = sshll.u32 %s202_s4, 4  ;;  %s196_s10 = scalar_lea.vmem [#allocation8], %s971_s27  ;;  %s204_s9 = int_to_ptr.hbm [resolvable:$true] %s203_s9 }
  0x1d   : > { %1007 = dma.hbm_to_vmem [thread:$0]  (!%p1005_p0), %s155_s22, 512, %s157_s26, [#allocation4], %s1276_s5, %s1276_s5, %s1277_s8  }
  0x1e   : > { %s205_s20 = sshll.u32 %s196_s10, 4  ;;  %217 = sbr.rel (%p1385_p12) target bundleno = 417 (0x1a1), region = 32  ;;  %s206_s20 = int_to_ptr.vmem [resolvable:$true] %s205_s20 }
  0x1f   : > { %1014 = dma.hbm_to_vmem [thread:$0]  (!%p1359_p6), %s204_s9, 8192, %s206_s20, %s1363_s7, %s1276_s5, %s1276_s5, %s1277_s8  }
  0x23   : > { %1237 = dma.done.wait (%p77_p8), [#allocation4], 512  }
  0x24   : > { %1239 = vsyncadd (%p77_p8), [#allocation4], 4294966784  ;;  %s224_s23 = sand.u32 1, %s1369_s11   ;;  %s226_s21 = sand.u32 1, %s1254_s13  }
  0x25   : > { %s977_s22 = sshll.u32 %s226_s21, 10  ;;  %s225_s12 = scalar_lea.sflag [#allocation7], %s224_s23 }
  0x26   : > { %s1408_s26 = scalar_lea.vmem [#allocation6], %s977_s22 }
  0x27   : > { %1241 = dma.done.wait (%p1378_p11), %s225_s12, 24576  }
  0x28   : > { %1243 = vsyncadd (%p1378_p11), %s225_s12, 4294942720  ;;  %s978_s6 = sshll.u32 %s226_s21, 9  ;;  %p979_p1 = scmp.ne.s32.totalorder %s1262_s15, 0 }
  0x29   : > { %s1414_s7 = scalar_lea.vmem [#allocation8], %s978_s6 }
  0x2a   : > { %269 = sbr.rel (%p979_p1) target bundleno = 52 (0x34), region = 48 }
  0x2f   : > { %v1278_v0 = vmov 0.0  }
  0x30   : > { %270 = vst [vmem:[#allocation2 + $0x10] sm:$0xff] %v1278_v0 }
  0x31   : > { %271 = vst [vmem:[#allocation2] sm:$0xff] %v1278_v0 }
  0x32   : > { %272 = vst [vmem:[#allocation2 + $0x18] sm:$0xff] %v1278_v0 }
  0x33   : > { %273 = vst [vmem:[#allocation2 + $0x8] sm:$0xff] %v1278_v0 }
  0x34 PF: > { %v338_v1 = vld [vmem:[%s1408_s26 + $0x1e0] sm:$0xff]  ;;  %v339_v3 = vld [vmem:[%s1408_s26 + $0x1e8] sm:$0xff]  ;;  %p984_p2 = scmp.ne.s32.totalorder %s1262_s15, 1 }
  0x35   : > { %v402_v2 = vld [vmem:[%s1408_s26 + $0x3e0] sm:$0xff]  ;;  %406 = vmatpush.msra.mxu0 %v338_v1  ;;  %v403_v4 = vld [vmem:[%s1408_s26 + $0x3e8] sm:$0xff]  ;;  %452 = vmatpush.msra.mxu2 %v339_v3  ;;  %v340_v3 = vld [vmem:[%s1408_s26 + $0x1f0] sm:$0xff] }
  0x36   : > { %429 = vmatpush.msra.mxu1 %v402_v2  ;;  %v334_v5 = vld [vmem:[%s1408_s26 + $0x1c0] sm:$0xff]  ;;  %475 = vmatpush.msra.mxu3 %v403_v4  ;;  %v335_v7 = vld [vmem:[%s1408_s26 + $0x1c8] sm:$0xff]  ;;  %v404_v4 = vld [vmem:[%s1408_s26 + $0x3f0] sm:$0xff] }
  0x37   : > { %v398_v6 = vld [vmem:[%s1408_s26 + $0x3c0] sm:$0xff]  ;;  %v399_v8 = vld [vmem:[%s1408_s26 + $0x3c8] sm:$0xff]  ;;  %407 = vmatpush.msra.mxu0 %v334_v5  ;;  %453 = vmatpush.msra.mxu2 %v335_v7  ;;  %v341_v5 = vld [vmem:[%s1408_s26 + $0x1f8] sm:$0xff] }
  0x38   : > { %v330_v9 = vld [vmem:[%s1408_s26 + $0x1a0] sm:$0xff]  ;;  %430 = vmatpush.msra.mxu1 %v398_v6  ;;  %v331_v11 = vld [vmem:[%s1408_s26 + $0x1a8] sm:$0xff]  ;;  %476 = vmatpush.msra.mxu3 %v399_v8  ;;  %v405_v6 = vld [vmem:[%s1408_s26 + $0x3f8] sm:$0xff] }
  0x39   : > { %v394_v10 = vld [vmem:[%s1408_s26 + $0x3a0] sm:$0xff]  ;;  %v395_v12 = vld [vmem:[%s1408_s26 + $0x3a8] sm:$0xff]  ;;  %408 = vmatpush.msra.mxu0 %v330_v9  ;;  %454 = vmatpush.msra.mxu2 %v331_v11  ;;  %v336_v7 = vld [vmem:[%s1408_s26 + $0x1d0] sm:$0xff] }
  0x3a   : > { %v326_v13 = vld [vmem:[%s1408_s26 + $0x180] sm:$0xff]  ;;  %431 = vmatpush.msra.mxu1 %v394_v10  ;;  %v327_v15 = vld [vmem:[%s1408_s26 + $0x188] sm:$0xff]  ;;  %477 = vmatpush.msra.mxu3 %v395_v12  ;;  %v400_v8 = vld [vmem:[%s1408_s26 + $0x3d0] sm:$0xff] }
  0x3b   : > { %v390_v14 = vld [vmem:[%s1408_s26 + $0x380] sm:$0xff]  ;;  %v391_v16 = vld [vmem:[%s1408_s26 + $0x388] sm:$0xff]  ;;  %409 = vmatpush.msra.mxu0 %v326_v13  ;;  %455 = vmatpush.msra.mxu2 %v327_v15  ;;  %v337_v9 = vld [vmem:[%s1408_s26 + $0x1d8] sm:$0xff] }
  0x3c   : > { %v322_v17 = vld [vmem:[%s1408_s26 + $0x160] sm:$0xff]  ;;  %432 = vmatpush.msra.mxu1 %v390_v14  ;;  %v323_v19 = vld [vmem:[%s1408_s26 + $0x168] sm:$0xff]  ;;  %478 = vmatpush.msra.mxu3 %v391_v16  ;;  %v401_v10 = vld [vmem:[%s1408_s26 + $0x3d8] sm:$0xff] }
  0x3d   : > { %v386_v18 = vld [vmem:[%s1408_s26 + $0x360] sm:$0xff]  ;;  %v387_v20 = vld [vmem:[%s1408_s26 + $0x368] sm:$0xff]  ;;  %410 = vmatpush.msra.mxu0 %v322_v17  ;;  %456 = vmatpush.msra.mxu2 %v323_v19  ;;  %v332_v11 = vld [vmem:[%s1408_s26 + $0x1b0] sm:$0xff] }
  0x3e   : > { %v318_v21 = vld [vmem:[%s1408_s26 + $0x140] sm:$0xff]  ;;  %433 = vmatpush.msra.mxu1 %v386_v18  ;;  %v319_v23 = vld [vmem:[%s1408_s26 + $0x148] sm:$0xff]  ;;  %479 = vmatpush.msra.mxu3 %v387_v20  ;;  %v396_v12 = vld [vmem:[%s1408_s26 + $0x3b0] sm:$0xff] }
  0x3f   : > { %v382_v22 = vld [vmem:[%s1408_s26 + $0x340] sm:$0xff]  ;;  %v383_v24 = vld [vmem:[%s1408_s26 + $0x348] sm:$0xff]  ;;  %411 = vmatpush.msra.mxu0 %v318_v21  ;;  %457 = vmatpush.msra.mxu2 %v319_v23  ;;  %v333_v13 = vld [vmem:[%s1408_s26 + $0x1b8] sm:$0xff] }
  0x40   : > { %v314_v25 = vld [vmem:[%s1408_s26 + $0x120] sm:$0xff]  ;;  %434 = vmatpush.msra.mxu1 %v382_v22  ;;  %v315_v27 = vld [vmem:[%s1408_s26 + $0x128] sm:$0xff]  ;;  %480 = vmatpush.msra.mxu3 %v383_v24  ;;  %v397_v14 = vld [vmem:[%s1408_s26 + $0x3b8] sm:$0xff] }
  0x41   : > { %v378_v26 = vld [vmem:[%s1408_s26 + $0x320] sm:$0xff]  ;;  %v379_v28 = vld [vmem:[%s1408_s26 + $0x328] sm:$0xff]  ;;  %412 = vmatpush.msra.mxu0 %v314_v25  ;;  %458 = vmatpush.msra.mxu2 %v315_v27  ;;  %v328_v15 = vld [vmem:[%s1408_s26 + $0x190] sm:$0xff] }
  0x42   : > { %v310_v29 = vld [vmem:[%s1408_s26 + $0x100] sm:$0xff]  ;;  %435 = vmatpush.msra.mxu1 %v378_v26  ;;  %v311_v31 = vld [vmem:[%s1408_s26 + $0x108] sm:$0xff]  ;;  %481 = vmatpush.msra.mxu3 %v379_v28  ;;  %v392_v16 = vld [vmem:[%s1408_s26 + $0x390] sm:$0xff] }
  0x43   : > { %v374_v30 = vld [vmem:[%s1408_s26 + $0x300] sm:$0xff]  ;;  %v375_v32 = vld [vmem:[%s1408_s26 + $0x308] sm:$0xff]  ;;  %413 = vmatpush.msra.mxu0 %v310_v29  ;;  %459 = vmatpush.msra.mxu2 %v311_v31  ;;  %v329_v17 = vld [vmem:[%s1408_s26 + $0x198] sm:$0xff] }
  0x44   : > { %v306_v33 = vld [vmem:[%s1408_s26 + $0xe0] sm:$0xff]  ;;  %436 = vmatpush.msra.mxu1 %v374_v30  ;;  %v307_v35 = vld [vmem:[%s1408_s26 + $0xe8] sm:$0xff]  ;;  %482 = vmatpush.msra.mxu3 %v375_v32  ;;  %v393_v18 = vld [vmem:[%s1408_s26 + $0x398] sm:$0xff] }
  0x45   : > { %v370_v34 = vld [vmem:[%s1408_s26 + $0x2e0] sm:$0xff]  ;;  %v371_v36 = vld [vmem:[%s1408_s26 + $0x2e8] sm:$0xff]  ;;  %414 = vmatpush.msra.mxu0 %v306_v33  ;;  %460 = vmatpush.msra.mxu2 %v307_v35  ;;  %v1505_v19 = vld [vmem:[#allocation3 + $0x10] sm:$0xff] }
  0x46   : > { %v302_v37 = vld [vmem:[%s1408_s26 + $0xc0] sm:$0xff]  ;;  %437 = vmatpush.msra.mxu1 %v370_v34  ;;  %v303_v39 = vld [vmem:[%s1408_s26 + $0xc8] sm:$0xff]  ;;  %483 = vmatpush.msra.mxu3 %v371_v36  ;;  %v1507_v20 = vld [vmem:[#allocation3 + $0x18] sm:$0xff] }
  0x47   : > { %v366_v38 = vld [vmem:[%s1408_s26 + $0x2c0] sm:$0xff]  ;;  %v367_v40 = vld [vmem:[%s1408_s26 + $0x2c8] sm:$0xff]  ;;  %415 = vmatpush.msra.mxu0 %v302_v37  ;;  %461 = vmatpush.msra.mxu2 %v303_v39  ;;  %v324_v21 = vld [vmem:[%s1408_s26 + $0x170] sm:$0xff] }
  0x48   : > { %v298_v41 = vld [vmem:[%s1408_s26 + $0xa0] sm:$0xff]  ;;  %438 = vmatpush.msra.mxu1 %v366_v38  ;;  %v299_v43 = vld [vmem:[%s1408_s26 + $0xa8] sm:$0xff]  ;;  %484 = vmatpush.msra.mxu3 %v367_v40  ;;  %v388_v22 = vld [vmem:[%s1408_s26 + $0x370] sm:$0xff] }
  0x49   : > { %v362_v42 = vld [vmem:[%s1408_s26 + $0x2a0] sm:$0xff]  ;;  %v363_v44 = vld [vmem:[%s1408_s26 + $0x2a8] sm:$0xff]  ;;  %416 = vmatpush.msra.mxu0 %v298_v41  ;;  %462 = vmatpush.msra.mxu2 %v299_v43  ;;  %v325_v23 = vld [vmem:[%s1408_s26 + $0x178] sm:$0xff] }
  0x4a   : > { %v294_v45 = vld [vmem:[%s1408_s26 + $0x80] sm:$0xff]  ;;  %439 = vmatpush.msra.mxu1 %v362_v42  ;;  %v295_v47 = vld [vmem:[%s1408_s26 + $0x88] sm:$0xff]  ;;  %485 = vmatpush.msra.mxu3 %v363_v44  ;;  %v389_v24 = vld [vmem:[%s1408_s26 + $0x378] sm:$0xff] }
  0x4b   : > { %v358_v46 = vld [vmem:[%s1408_s26 + $0x280] sm:$0xff]  ;;  %v359_v48 = vld [vmem:[%s1408_s26 + $0x288] sm:$0xff]  ;;  %417 = vmatpush.msra.mxu0 %v294_v45  ;;  %463 = vmatpush.msra.mxu2 %v295_v47  ;;  %v320_v25 = vld [vmem:[%s1408_s26 + $0x150] sm:$0xff] }
  0x4c   : > { %v290_v49 = vld [vmem:[%s1408_s26 + $0x60] sm:$0xff]  ;;  %440 = vmatpush.msra.mxu1 %v358_v46  ;;  %v291_v51 = vld [vmem:[%s1408_s26 + $0x68] sm:$0xff]  ;;  %486 = vmatpush.msra.mxu3 %v359_v48  ;;  %v384_v26 = vld [vmem:[%s1408_s26 + $0x350] sm:$0xff] }
  0x4d   : > { %v354_v50 = vld [vmem:[%s1408_s26 + $0x260] sm:$0xff]  ;;  %v355_v52 = vld [vmem:[%s1408_s26 + $0x268] sm:$0xff]  ;;  %418 = vmatpush.msra.mxu0 %v290_v49  ;;  %464 = vmatpush.msra.mxu2 %v291_v51  ;;  %v321_v27 = vld [vmem:[%s1408_s26 + $0x158] sm:$0xff] }
  0x4e   : > { %v286_v53 = vld [vmem:[%s1408_s26 + $0x40] sm:$0xff]  ;;  %441 = vmatpush.msra.mxu1 %v354_v50  ;;  %v287_v55 = vld [vmem:[%s1408_s26 + $0x48] sm:$0xff]  ;;  %487 = vmatpush.msra.mxu3 %v355_v52  ;;  %v385_v28 = vld [vmem:[%s1408_s26 + $0x358] sm:$0xff] }
  0x4f   : > { %v350_v54 = vld [vmem:[%s1408_s26 + $0x240] sm:$0xff]  ;;  %v351_v56 = vld [vmem:[%s1408_s26 + $0x248] sm:$0xff]  ;;  %419 = vmatpush.msra.mxu0 %v286_v53  ;;  %465 = vmatpush.msra.mxu2 %v287_v55  ;;  %v316_v29 = vld [vmem:[%s1408_s26 + $0x130] sm:$0xff] }
  0x50   : > { %v282_v57 = vld [vmem:[%s1408_s26 + $0x20] sm:$0xff]  ;;  %442 = vmatpush.msra.mxu1 %v350_v54  ;;  %v283_v59 = vld [vmem:[%s1408_s26 + $0x28] sm:$0xff]  ;;  %488 = vmatpush.msra.mxu3 %v351_v56  ;;  %v380_v30 = vld [vmem:[%s1408_s26 + $0x330] sm:$0xff] }
  0x51   : > { %v346_v58 = vld [vmem:[%s1408_s26 + $0x220] sm:$0xff]  ;;  %v347_v60 = vld [vmem:[%s1408_s26 + $0x228] sm:$0xff]  ;;  %420 = vmatpush.msra.mxu0 %v282_v57  ;;  %466 = vmatpush.msra.mxu2 %v283_v59  ;;  %v317_v31 = vld [vmem:[%s1408_s26 + $0x138] sm:$0xff] }
  0x52   : > { %v278_v61 = vld [vmem:[%s1408_s26] sm:$0xff]  ;;  %443 = vmatpush.msra.mxu1 %v346_v58  ;;  %v279_v63 = vld [vmem:[%s1408_s26 + $0x8] sm:$0xff]  ;;  %489 = vmatpush.msra.mxu3 %v347_v60  ;;  %v381_v32 = vld [vmem:[%s1408_s26 + $0x338] sm:$0xff] }
  0x53   : > { %v342_v62 = vld [vmem:[%s1408_s26 + $0x200] sm:$0xff]  ;;  %v343_v0 = vld [vmem:[%s1408_s26 + $0x208] sm:$0xff]  ;;  %421 = vmatpush.msra.mxu0 %v278_v61  ;;  %467 = vmatpush.msra.mxu2 %v279_v63  ;;  %v312_v33 = vld [vmem:[%s1408_s26 + $0x110] sm:$0xff] }
  0x54   : > { %v1481_v1 = vld [vmem:[#allocation3] sm:$0xff]  ;;  %v1483_v2 = vld [vmem:[#allocation3 + $0x8] sm:$0xff]  ;;  %444 = vmatpush.msra.mxu1 %v342_v62  ;;  %490 = vmatpush.msra.mxu3 %v343_v0  ;;  %v376_v34 = vld [vmem:[%s1408_s26 + $0x310] sm:$0xff] }
  0x55   : > { %422 = vmatmul.f32.vlgmr.msra.gmra.mxu0 %v1481_v1  ;;  %445 = vmatmul.f32.vlgmr.msra.gmra.mxu1 %v1483_v2  ;;  %v313_v35 = vld [vmem:[%s1408_s26 + $0x118] sm:$0xff]  ;;  %v308_v37 = vld [vmem:[%s1408_s26 + $0xf0] sm:$0xff] }
  0x56   : > { %468 = vmatmul.f32.vlgmr.msra.gmra.mxu2 %v1481_v1  ;;  %491 = vmatmul.f32.vlgmr.msra.gmra.mxu3 %v1483_v2  ;;  %v377_v36 = vld [vmem:[%s1408_s26 + $0x318] sm:$0xff]  ;;  %v372_v38 = vld [vmem:[%s1408_s26 + $0x2f0] sm:$0xff] }
  0x57   : > { %498 = vmatpush.msrb.mxu0 %v340_v3  ;;  %521 = vmatpush.msrb.mxu1 %v404_v4  ;;  %v309_v39 = vld [vmem:[%s1408_s26 + $0xf8] sm:$0xff]  ;;  %v304_v41 = vld [vmem:[%s1408_s26 + $0xd0] sm:$0xff] }
  0x58   : > { %544 = vmatpush.msrb.mxu2 %v341_v5  ;;  %567 = vmatpush.msrb.mxu3 %v405_v6  ;;  %v373_v40 = vld [vmem:[%s1408_s26 + $0x2f8] sm:$0xff]  ;;  %v368_v42 = vld [vmem:[%s1408_s26 + $0x2d0] sm:$0xff] }
  0x59   : > { %499 = vmatpush.msrb.mxu0 %v336_v7  ;;  %522 = vmatpush.msrb.mxu1 %v400_v8  ;;  %v305_v43 = vld [vmem:[%s1408_s26 + $0xd8] sm:$0xff]  ;;  %v300_v45 = vld [vmem:[%s1408_s26 + $0xb0] sm:$0xff] }
  0x5a   : > { %545 = vmatpush.msrb.mxu2 %v337_v9  ;;  %568 = vmatpush.msrb.mxu3 %v401_v10  ;;  %v369_v44 = vld [vmem:[%s1408_s26 + $0x2d8] sm:$0xff]  ;;  %v364_v46 = vld [vmem:[%s1408_s26 + $0x2b0] sm:$0xff]  ;;  %v706_v9 = vld [vmem:[%s1414_s7 + $0xe0] sm:$0xff] }
  0x5b   : > { %500 = vmatpush.msrb.mxu0 %v332_v11  ;;  %523 = vmatpush.msrb.mxu1 %v396_v12  ;;  %v301_v47 = vld [vmem:[%s1408_s26 + $0xb8] sm:$0xff]  ;;  %v296_v49 = vld [vmem:[%s1408_s26 + $0x90] sm:$0xff]  ;;  %v702_v11 = vld [vmem:[%s1414_s7 + $0xc0] sm:$0xff] }
  0x5c   : > { %546 = vmatpush.msrb.mxu2 %v333_v13  ;;  %569 = vmatpush.msrb.mxu3 %v397_v14  ;;  %v365_v48 = vld [vmem:[%s1408_s26 + $0x2b8] sm:$0xff]  ;;  %v360_v50 = vld [vmem:[%s1408_s26 + $0x290] sm:$0xff]  ;;  %v703_v13 = vld [vmem:[%s1414_s7 + $0xc8] sm:$0xff] }
  0x5d   : > { %501 = vmatpush.msrb.mxu0 %v328_v15  ;;  %524 = vmatpush.msrb.mxu1 %v392_v16  ;;  %v297_v51 = vld [vmem:[%s1408_s26 + $0x98] sm:$0xff]  ;;  %v292_v53 = vld [vmem:[%s1408_s26 + $0x70] sm:$0xff]  ;;  %v738_v16 = vld [vmem:[%s1414_s7 + $0x1e0] sm:$0xff] }
  0x5e   : > { %547 = vmatpush.msrb.mxu2 %v329_v17  ;;  %570 = vmatpush.msrb.mxu3 %v393_v18  ;;  %v361_v52 = vld [vmem:[%s1408_s26 + $0x298] sm:$0xff]  ;;  %v356_v54 = vld [vmem:[%s1408_s26 + $0x270] sm:$0xff]  ;;  %v739_v18 = vld [vmem:[%s1414_s7 + $0x1e8] sm:$0xff] }
  0x5f   : > { %425 = vmatmul.f32.gmra.mxu0 %v1505_v19  ;;  %448 = vmatmul.f32.gmra.mxu1 %v1507_v20  ;;  %v293_v55 = vld [vmem:[%s1408_s26 + $0x78] sm:$0xff]  ;;  %v288_v57 = vld [vmem:[%s1408_s26 + $0x50] sm:$0xff] }
  0x60   : > { %471 = vmatmul.f32.gmra.mxu2 %v1505_v19  ;;  %494 = vmatmul.f32.gmra.mxu3 %v1507_v20  ;;  %v357_v56 = vld [vmem:[%s1408_s26 + $0x278] sm:$0xff]  ;;  %v352_v58 = vld [vmem:[%s1408_s26 + $0x250] sm:$0xff] }
  0x61   : > { %502 = vmatpush.msrb.mxu0 %v324_v21  ;;  %525 = vmatpush.msrb.mxu1 %v388_v22  ;;  %v289_v59 = vld [vmem:[%s1408_s26 + $0x58] sm:$0xff]  ;;  %v284_v61 = vld [vmem:[%s1408_s26 + $0x30] sm:$0xff]  ;;  %v699_v21 = vld [vmem:[%s1414_s7 + $0xa8] sm:$0xff] }
  0x62   : > { %548 = vmatpush.msrb.mxu2 %v325_v23  ;;  %571 = vmatpush.msrb.mxu3 %v389_v24  ;;  %v353_v60 = vld [vmem:[%s1408_s26 + $0x258] sm:$0xff]  ;;  %v348_v62 = vld [vmem:[%s1408_s26 + $0x230] sm:$0xff]  ;;  %v734_v24 = vld [vmem:[%s1414_s7 + $0x1c0] sm:$0xff] }
  0x63   : > { %503 = vmatpush.msrb.mxu0 %v320_v25  ;;  %526 = vmatpush.msrb.mxu1 %v384_v26  ;;  %v285_v63 = vld [vmem:[%s1408_s26 + $0x38] sm:$0xff]  ;;  %v280_v3 = vld [vmem:[%s1408_s26 + $0x10] sm:$0xff]  ;;  %v735_v26 = vld [vmem:[%s1414_s7 + $0x1c8] sm:$0xff] }
  0x64   : > { %549 = vmatpush.msrb.mxu2 %v321_v27  ;;  %572 = vmatpush.msrb.mxu3 %v385_v28  ;;  %v349_v0 = vld [vmem:[%s1408_s26 + $0x238] sm:$0xff]  ;;  %v344_v4 = vld [vmem:[%s1408_s26 + $0x210] sm:$0xff]  ;;  %v694_v27 = vld [vmem:[%s1414_s7 + $0x80] sm:$0xff] }
  0x65   : > { %504 = vmatpush.msrb.mxu0 %v316_v29  ;;  %527 = vmatpush.msrb.mxu1 %v380_v30  ;;  %v281_v5 = vld [vmem:[%s1408_s26 + $0x18] sm:$0xff]  ;;  %v708_v7 = vld [vmem:[%s1414_s7 + $0xf0] sm:$0xff]  ;;  %v695_v29 = vld [vmem:[%s1414_s7 + $0x88] sm:$0xff] }
  0x66   : > { %550 = vmatpush.msrb.mxu2 %v317_v31  ;;  %573 = vmatpush.msrb.mxu3 %v381_v32  ;;  %v345_v6 = vld [vmem:[%s1408_s26 + $0x218] sm:$0xff]  ;;  %v740_v12 = vld [vmem:[%s1414_s7 + $0x1f0] sm:$0xff]  ;;  %v730_v32 = vld [vmem:[%s1414_s7 + $0x1a0] sm:$0xff] }
  0x67   : > { %505 = vmatpush.msrb.mxu0 %v312_v33  ;;  %528 = vmatpush.msrb.mxu1 %v376_v34  ;;  %v709_v8 = vld [vmem:[%s1414_s7 + $0xf8] sm:$0xff]  ;;  %v700_v15 = vld [vmem:[%s1414_s7 + $0xb0] sm:$0xff]  ;;  %v731_v34 = vld [vmem:[%s1414_s7 + $0x1a8] sm:$0xff] }
  0x68   : > { %551 = vmatpush.msrb.mxu2 %v313_v35  ;;  %574 = vmatpush.msrb.mxu3 %v377_v36  ;;  %v705_v10 = vld [vmem:[%s1414_s7 + $0xd8] sm:$0xff]  ;;  %v696_v23 = vld [vmem:[%s1414_s7 + $0x90] sm:$0xff]  ;;  %v690_v35 = vld [vmem:[%s1414_s7 + $0x60] sm:$0xff] }
  0x69   : > { %506 = vmatpush.msrb.mxu0 %v308_v37  ;;  %529 = vmatpush.msrb.mxu1 %v372_v38  ;;  %v741_v14 = vld [vmem:[%s1414_s7 + $0x1f8] sm:$0xff]  ;;  %v732_v28 = vld [vmem:[%s1414_s7 + $0x1b0] sm:$0xff]  ;;  %v691_v37 = vld [vmem:[%s1414_s7 + $0x68] sm:$0xff] }
  0x6a   : > { %552 = vmatpush.msrb.mxu2 %v309_v39  ;;  %575 = vmatpush.msrb.mxu3 %v373_v40  ;;  %v701_v17 = vld [vmem:[%s1414_s7 + $0xb8] sm:$0xff]  ;;  %v692_v31 = vld [vmem:[%s1414_s7 + $0x70] sm:$0xff]  ;;  %v726_v40 = vld [vmem:[%s1414_s7 + $0x180] sm:$0xff] }
  0x6b   : > { %507 = vmatpush.msrb.mxu0 %v304_v41  ;;  %530 = vmatpush.msrb.mxu1 %v368_v42  ;;  %v737_v22 = vld [vmem:[%s1414_s7 + $0x1d8] sm:$0xff]  ;;  %v728_v36 = vld [vmem:[%s1414_s7 + $0x190] sm:$0xff]  ;;  %v727_v42 = vld [vmem:[%s1414_s7 + $0x188] sm:$0xff] }
  0x6c   : > { %553 = vmatpush.msrb.mxu2 %v305_v43  ;;  %576 = vmatpush.msrb.mxu3 %v369_v44  ;;  %v697_v25 = vld [vmem:[%s1414_s7 + $0x98] sm:$0xff]  ;;  %v688_v39 = vld [vmem:[%s1414_s7 + $0x50] sm:$0xff] }
  0x6d   : > { %508 = vmatpush.msrb.mxu0 %v300_v45  ;;  %531 = vmatpush.msrb.mxu1 %v364_v46  ;;  %v733_v30 = vld [vmem:[%s1414_s7 + $0x1b8] sm:$0xff]  ;;  %v686_v45 = vld [vmem:[%s1414_s7 + $0x40] sm:$0xff]  ;;  %v724_v46 = vld [vmem:[%s1414_s7 + $0x170] sm:$0xff] }
  0x6e   : > { %554 = vmatpush.msrb.mxu2 %v301_v47  ;;  %577 = vmatpush.msrb.mxu3 %v365_v48  ;;  %v693_v33 = vld [vmem:[%s1414_s7 + $0x78] sm:$0xff]  ;;  %v687_v47 = vld [vmem:[%s1414_s7 + $0x48] sm:$0xff] }
  0x6f   : > { %509 = vmatpush.msrb.mxu0 %v296_v49  ;;  %532 = vmatpush.msrb.mxu1 %v360_v50  ;;  %v729_v38 = vld [vmem:[%s1414_s7 + $0x198] sm:$0xff]  ;;  %v684_v50 = vld [vmem:[%s1414_s7 + $0x30] sm:$0xff] }
  0x70   : > { %555 = vmatpush.msrb.mxu2 %v297_v51  ;;  %578 = vmatpush.msrb.mxu3 %v361_v52  ;;  %v689_v41 = vld [vmem:[%s1414_s7 + $0x58] sm:$0xff]  ;;  %v722_v51 = vld [vmem:[%s1414_s7 + $0x160] sm:$0xff] }
  0x71   : > { %510 = vmatpush.msrb.mxu0 %v292_v53  ;;  %533 = vmatpush.msrb.mxu1 %v356_v54  ;;  %v725_v49 = vld [vmem:[%s1414_s7 + $0x178] sm:$0xff]  ;;  %v723_v54 = vld [vmem:[%s1414_s7 + $0x168] sm:$0xff] }
  0x72   : > { %556 = vmatpush.msrb.mxu2 %v293_v55  ;;  %579 = vmatpush.msrb.mxu3 %v357_v56  ;;  %v685_v52 = vld [vmem:[%s1414_s7 + $0x38] sm:$0xff]  ;;  %v682_v55 = vld [vmem:[%s1414_s7 + $0x20] sm:$0xff]  ;;  %v720_v56 = vld [vmem:[%s1414_s7 + $0x150] sm:$0xff] }
  0x73   : > { %511 = vmatpush.msrb.mxu0 %v288_v57  ;;  %534 = vmatpush.msrb.mxu1 %v352_v58  ;;  %v683_v57 = vld [vmem:[%s1414_s7 + $0x28] sm:$0xff]  ;;  %v721_v58 = vld [vmem:[%s1414_s7 + $0x158] sm:$0xff] }
  0x74   : > { %557 = vmatpush.msrb.mxu2 %v289_v59  ;;  %580 = vmatpush.msrb.mxu3 %v353_v60  ;;  %v680_v59 = vld [vmem:[%s1414_s7 + $0x10] sm:$0xff]  ;;  %v718_v60 = vld [vmem:[%s1414_s7 + $0x140] sm:$0xff] }
  0x75   : > { %512 = vmatpush.msrb.mxu0 %v284_v61  ;;  %535 = vmatpush.msrb.mxu1 %v348_v62  ;;  %v681_v61 = vld [vmem:[%s1414_s7 + $0x18] sm:$0xff] }
  0x76   : > { %558 = vmatpush.msrb.mxu2 %v285_v63  ;;  %581 = vmatpush.msrb.mxu3 %v349_v0  ;;  %v719_v0 = vld [vmem:[%s1414_s7 + $0x148] sm:$0xff] }
  0x77   : > { %513 = vmatpush.msrb.mxu0 %v280_v3  ;;  %536 = vmatpush.msrb.mxu1 %v344_v4  ;;  %v678_v4 = vld [vmem:[%s1414_s7] sm:$0xff] }
  0x78   : > { %559 = vmatpush.msrb.mxu2 %v281_v5  ;;  %582 = vmatpush.msrb.mxu3 %v345_v6  ;;  %v716_v5 = vld [vmem:[%s1414_s7 + $0x130] sm:$0xff]  ;;  %v679_v6 = vld [vmem:[%s1414_s7 + $0x8] sm:$0xff] }
  0x79   : > { %514 = vmatmul.f32.vlgmr.msrb.gmra.mxu0 %v1481_v1  ;;  %537 = vmatmul.f32.vlgmr.msrb.gmra.mxu1 %v1483_v2 }
  0x7a   : > { %560 = vmatmul.f32.vlgmr.msrb.gmra.mxu2 %v1481_v1  ;;  %583 = vmatmul.f32.vlgmr.msrb.gmra.mxu3 %v1483_v2  ;;  %v707_v1 = vld [vmem:[%s1414_s7 + $0xe8] sm:$0xff]  ;;  %v704_v2 = vld [vmem:[%s1414_s7 + $0xd0] sm:$0xff] }
  0x7b   : > { %742 = vmatpush.msra.mxu0 %v708_v7  ;;  %788 = vmatpush.msra.mxu2 %v709_v8  ;;  %v717_v7 = vld [vmem:[%s1414_s7 + $0x138] sm:$0xff] }
  0x7c   : > { %765 = vmatpush.msra.mxu1 %v740_v12  ;;  %811 = vmatpush.msra.mxu3 %v741_v14  ;;  %v712_v14 = vld [vmem:[%s1414_s7 + $0x110] sm:$0xff] }
  0x7d   : > { %743 = vmatpush.msra.mxu0 %v706_v9  ;;  %789 = vmatpush.msra.mxu2 %v707_v1 }
  0x7e   : > { %766 = vmatpush.msra.mxu1 %v738_v16  ;;  %812 = vmatpush.msra.mxu3 %v739_v18  ;;  %v711_v18 = vld [vmem:[%s1414_s7 + $0x108] sm:$0xff] }
  0x7f   : > { %744 = vmatpush.msra.mxu0 %v704_v2  ;;  %790 = vmatpush.msra.mxu2 %v705_v10  ;;  %v714_v2 = vld [vmem:[%s1414_s7 + $0x120] sm:$0xff]  ;;  %v715_v10 = vld [vmem:[%s1414_s7 + $0x128] sm:$0xff] }
  0x80   : > { %813 = vmatpush.msra.mxu3 %v737_v22 }
  0x81   : > { %517 = vmatmul.f32.gmra.mxu0 %v1505_v19  ;;  %540 = vmatmul.f32.gmra.mxu1 %v1507_v20 }
  0x82   : > { %563 = vmatmul.f32.gmra.mxu2 %v1505_v19  ;;  %586 = vmatmul.f32.gmra.mxu3 %v1507_v20  ;;  %v698_v19 = vld [vmem:[%s1414_s7 + $0xa0] sm:$0xff]  ;;  %v736_v20 = vld [vmem:[%s1414_s7 + $0x1d0] sm:$0xff] }
  0x83   : > { %745 = vmatpush.msra.mxu0 %v702_v11  ;;  %791 = vmatpush.msra.mxu2 %v703_v13 }
  0x84   : > { %767 = vmatpush.msra.mxu1 %v736_v20  ;;  %814 = vmatpush.msra.mxu3 %v735_v26 }
  0x85   : > { %746 = vmatpush.msra.mxu0 %v700_v15  ;;  %792 = vmatpush.msra.mxu2 %v701_v17  ;;  %v713_v15 = vld [vmem:[%s1414_s7 + $0x118] sm:$0xff]  ;;  %v710_v17 = vld [vmem:[%s1414_s7 + $0x100] sm:$0xff] }
  0x86   : > { %768 = vmatpush.msra.mxu1 %v734_v24  ;;  %815 = vmatpush.msra.mxu3 %v733_v30 }
  0x87   : > { %747 = vmatpush.msra.mxu0 %v698_v19  ;;  %793 = vmatpush.msra.mxu2 %v699_v21 }
  0x88   : > { %769 = vmatpush.msra.mxu1 %v732_v28  ;;  %816 = vmatpush.msra.mxu3 %v731_v34 }
  0x89   : > { %748 = vmatpush.msra.mxu0 %v696_v23  ;;  %794 = vmatpush.msra.mxu2 %v697_v25 }
  0x8a   : > { %770 = vmatpush.msra.mxu1 %v730_v32  ;;  %817 = vmatpush.msra.mxu3 %v729_v38 }
  0x8b   : > { %749 = vmatpush.msra.mxu0 %v694_v27  ;;  %795 = vmatpush.msra.mxu2 %v695_v29 }
  0x8c   : > { %771 = vmatpush.msra.mxu1 %v728_v36  ;;  %818 = vmatpush.msra.mxu3 %v727_v42 }
  0x8d   : > { %750 = vmatpush.msra.mxu0 %v692_v31  ;;  %796 = vmatpush.msra.mxu2 %v693_v33 }
  0x8e   : > { %772 = vmatpush.msra.mxu1 %v726_v40  ;;  %819 = vmatpush.msra.mxu3 %v725_v49 }
  0x8f   : > { %751 = vmatpush.msra.mxu0 %v690_v35  ;;  %797 = vmatpush.msra.mxu2 %v691_v37 }
  0x90   : > { %773 = vmatpush.msra.mxu1 %v724_v46  ;;  %820 = vmatpush.msra.mxu3 %v723_v54 }
  0x91   : > { %752 = vmatpush.msra.mxu0 %v688_v39  ;;  %798 = vmatpush.msra.mxu2 %v689_v41 }
  0x92   : > { %774 = vmatpush.msra.mxu1 %v722_v51  ;;  %821 = vmatpush.msra.mxu3 %v721_v58 }
  0x93   : > { %753 = vmatpush.msra.mxu0 %v686_v45  ;;  %799 = vmatpush.msra.mxu2 %v687_v47 }
  0x94   : > { %775 = vmatpush.msra.mxu1 %v720_v56  ;;  %822 = vmatpush.msra.mxu3 %v719_v0 }
  0x95   : > { %754 = vmatpush.msra.mxu0 %v684_v50  ;;  %800 = vmatpush.msra.mxu2 %v685_v52 }
  0x96   : > { %776 = vmatpush.msra.mxu1 %v718_v60  ;;  %823 = vmatpush.msra.mxu3 %v717_v7 }
  0x97   : > { %755 = vmatpush.msra.mxu0 %v682_v55  ;;  %801 = vmatpush.msra.mxu2 %v683_v57 }
  0x98   : > { %777 = vmatpush.msra.mxu1 %v716_v5  ;;  %824 = vmatpush.msra.mxu3 %v715_v10 }
  0x99   : > { %756 = vmatpush.msra.mxu0 %v680_v59  ;;  %802 = vmatpush.msra.mxu2 %v681_v61 }
  0x9a   : > { %778 = vmatpush.msra.mxu1 %v714_v2  ;;  %825 = vmatpush.msra.mxu3 %v713_v15 }
  0x9b   : > { %757 = vmatpush.msra.mxu0 %v678_v4  ;;  %803 = vmatpush.msra.mxu2 %v679_v6 }
  0x9c   : > { %779 = vmatpush.msra.mxu1 %v712_v14  ;;  %826 = vmatpush.msra.mxu3 %v711_v18 }
  0x9e   : > { %780 = vmatpush.msra.mxu1 %v710_v17 }
  0xd2   : > { %v423_v43 = vpop.f32.mrf.mxu0  ;;  %v446_v44 = vpop.f32.mrf.mxu1 }
  0xd3   : > { %v1610_v48 = vadd.f32 %v446_v44, %v423_v43 }
  0xd5   : > { %v980_v53 = vmul.f32 -1.442695, %v1610_v48 }
  0xd7   : > { %1078 = vpow2.f32 %v980_v53 }
  0xd9   : > { %v469_v62 = vpop.f32.mrf.mxu2  ;;  %v492_v63 = vpop.f32.mrf.mxu3 }
  0xda   : > { %v1626_v3 = vadd.f32 %v492_v63, %v469_v62 }
  0xdc   : > { %v981_v8 = vmul.f32 -1.442695, %v1626_v3  ;;  %v426_v9 = vpop.f32.mrf.mxu0  ;;  %v449_v1 = vpop.f32.mrf.mxu1 }
  0xdd   : > { %v1079_v11 = vpop.eup %1078  ;;  %v1635_v12 = vadd.f32 %v449_v1, %v426_v9 }
  0xde   : > { %v602_v13 = vadd.f32 1.0, %v1079_v11  ;;  %1080 = vpow2.f32 %v981_v8 }
  0xdf   : > { %v982_v16 = vmul.f32 -1.442695, %v1635_v12 }
  0xe0   : > { %1082 = vrcp.f32 %v602_v13  ;;  %vm611_vm0 = vweird.f32 %v602_v13  ;;  %v617_v31 = vand.u32 2147483648, %v602_v13  ;;  %v615_v34 = vand.u32 2147483647, %v602_v13 }
  0xe1   : > { %1084 = vpow2.f32 %v982_v16 }
  0xe2   : > { %v618_v40 = vor.u32 1.1754944e-38, %v617_v31  ;;  %vm616_vm3 = vcmp.eq.f32.partialorder %v615_v34, 8.507059e+37 }
  0xe3   : > { %v472_v19 = vpop.f32.mrf.mxu2  ;;  %v495_v20 = vpop.f32.mrf.mxu3 }
  0xe4   : > { %v1081_v21 = vpop.eup %1080  ;;  %v1642_v22 = vadd.f32 %v495_v20, %v472_v19 }
  0xe5   : > { %v603_v23 = vadd.f32 1.0, %v1081_v21 }
  0xe6   : > { %v1083_v24 = vpop.eup %1082  ;;  %v983_v25 = vmul.f32 -1.442695, %v1642_v22 }
  0xe7   : > { %v1085_v26 = vpop.eup %1084  ;;  %v607_v27 = vmul.f32 %v1083_v24, %v602_v13  ;;  %1086 = vrcp.f32 %v603_v23  ;;  %vm612_vm1 = vweird.f32 %v1083_v24  ;;  %vm626_vm5 = vweird.f32 %v603_v23 }
  0xe8   : > { %v604_v28 = vadd.f32 1.0, %v1085_v26  ;;  %1088 = vpow2.f32 %v983_v25  ;;  %vm613_vm2 = vmor %vm611_vm0, %vm612_vm1  ;;  %v632_v45 = vand.u32 2147483648, %v603_v23  ;;  %v630_v49 = vand.u32 2147483647, %v603_v23 }
  0xe9   : > { %v608_v29 = vsub.f32 1.0, %v607_v27 }
  0xea   : > { %1090 = vrcp.f32 %v604_v28  ;;  %vm641_vm6 = vweird.f32 %v604_v28  ;;  %v647_v50 = vand.u32 2147483648, %v604_v28  ;;  %v645_v54 = vand.u32 2147483647, %v604_v28 }
  0xeb   : > { %v609_v30 = vmul.f32 %v1083_v24, %v608_v29  ;;  %v633_v59 = vor.u32 1.1754944e-38, %v632_v45  ;;  %vm631_vm9 = vcmp.eq.f32.partialorder %v630_v49, 8.507059e+37 }
  0xec   : > { %vm646_vm11 = vcmp.eq.f32.partialorder %v645_v54, 8.507059e+37 }
  0xed   : > { %v1087_v32 = vpop.eup %1086  ;;  %v610_v33 = vadd.f32 %v1083_v24, %v609_v30 }
  0xee   : > { %v1089_v35 = vpop.eup %1088  ;;  %v622_v36 = vmul.f32 %v1087_v32, %v603_v23  ;;  %vm627_vm4 = vweird.f32 %v1087_v32 }
  0xef   : > { %v614_v37 = vsel %vm613_vm2, %v1083_v24, %v610_v33  ;;  %v605_v38 = vadd.f32 1.0, %v1089_v35  ;;  %vm1646_vm7 = vmor %vm626_vm5, %vm627_vm4  ;;  %v675_v33 = vld [vmem:[#allocation2] sm:$0xff] }
  0xf0   : > { %v1091_v39 = vpop.eup %1090  ;;  %v623_v41 = vsub.f32 1.0, %v622_v36  ;;  %v619_v43 = vsel %vm616_vm3, %v618_v40, %v614_v37  ;;  %v676_v37 = vld [vmem:[#allocation2 + $0x18] sm:$0xff] }
  0xf1   : > { %v637_v42 = vmul.f32 %v1091_v39, %v604_v28  ;;  %1092 = vrcp.f32 %v605_v38  ;;  %v666_v51 = vmul.f32 %v619_v43, %v1610_v48  ;;  %vm642_vm8 = vweird.f32 %v1091_v39  ;;  %v674_v28 = vld [vmem:[#allocation2 + $0x10] sm:$0xff] }
  0xf2   : > { %v624_v44 = vmul.f32 %v1087_v32, %v623_v41  ;;  %vm643_vm10 = vmor %vm641_vm6, %vm642_vm8  ;;  %v648_v48 = vor.u32 1.1754944e-38, %v647_v50  ;;  %v662_v7 = vand.u32 2147483648, %v605_v38  ;;  %v660_v1 = vand.u32 2147483647, %v605_v38 }
  0xf3   : > { %v638_v46 = vsub.f32 1.0, %v637_v42  ;;  %vm656_vm13 = vweird.f32 %v605_v38  ;;  %v677_v42 = vld [vmem:[#allocation2 + $0x8] sm:$0xff] }
  0xf4   : > { %v625_v47 = vadd.f32 %v1087_v32, %v624_v44  ;;  %v663_v17 = vor.u32 1.1754944e-38, %v662_v7  ;;  %vm661_vm15 = vcmp.eq.f32.partialorder %v660_v1, 8.507059e+37 }
  0xf5   : > { %v639_v53 = vmul.f32 %v1091_v39, %v638_v46 }
  0xf6   : > { %v629_v55 = vsel %vm1646_vm7, %v1087_v32, %v625_v47  ;;  %v515_v56 = vpop.f32.mrf.mxu0  ;;  %v538_v57 = vpop.f32.mrf.mxu1 }
  0xf7   : > { %v1093_v58 = vpop.eup %1092  ;;  %v640_v60 = vadd.f32 %v1091_v39, %v639_v53  ;;  %v539_v61 = vadd.f32 %v538_v57, %v515_v56  ;;  %v634_v63 = vsel %vm631_vm9, %v633_v59, %v629_v55 }
  0xf8   : > { %v652_v62 = vmul.f32 %v1093_v58, %v605_v38  ;;  %v667_v8 = vmul.f32 %v634_v63, %v1626_v3  ;;  %vm657_vm12 = vweird.f32 %v1093_v58 }
  0xf9   : > { %v644_v0 = vsel %vm643_vm10, %v1091_v39, %v640_v60  ;;  %v670_v4 = vmul.f32 %v666_v51, %v539_v61  ;;  %vm658_vm14 = vmor %vm656_vm13, %vm657_vm12 }
  0xfa   : > { %v649_v5 = vsel %vm646_vm11, %v648_v48, %v644_v0  ;;  %v653_v6 = vsub.f32 1.0, %v652_v62 }
  0xfb   : > { %758 = vmatmul.f32.vlgmr.msra.gmra.mxu0 %v670_v4  ;;  %804 = vmatmul.f32.vlgmr.msra.gmra.mxu2 %v670_v4  ;;  %v668_v2 = vmul.f32 %v649_v5, %v1635_v12 }
  0xfc   : > { %v654_v9 = vmul.f32 %v1093_v58, %v653_v6 }
  0xfd   : > { %v561_v10 = vpop.f32.mrf.mxu2  ;;  %v584_v11 = vpop.f32.mrf.mxu3 }
  0xfe   : > { %v655_v13 = vadd.f32 %v1093_v58, %v654_v9  ;;  %v585_v14 = vadd.f32 %v584_v11, %v561_v10  ;;  %v518_v15 = vpop.f32.mrf.mxu0  ;;  %v541_v16 = vpop.f32.mrf.mxu1 }
  0xff   : > { %v542_v18 = vadd.f32 %v541_v16, %v518_v15 }
 0x100   : > { %v659_v19 = vsel %vm658_vm14, %v1093_v58, %v655_v13  ;;  %v671_v20 = vmul.f32 %v667_v8, %v585_v14 }
 0x101   : > { %v664_v21 = vsel %vm661_vm15, %v663_v17, %v659_v19  ;;  %v672_v3 = vmul.f32 %v668_v2, %v542_v18 }
 0x102   : > { %781 = vmatmul.f32.vlgmr.msra.gmra.mxu1 %v671_v20  ;;  %827 = vmatmul.f32.vlgmr.msra.gmra.mxu3 %v671_v20  ;;  %v669_v12 = vmul.f32 %v664_v21, %v1642_v22 }
 0x103   : > { %761 = vmatmul.f32.gmra.mxu0 %v672_v3  ;;  %807 = vmatmul.f32.gmra.mxu2 %v672_v3 }
 0x105   : > { %v564_v23 = vpop.f32.mrf.mxu2  ;;  %v587_v24 = vpop.f32.mrf.mxu3 }
 0x106   : > { %v588_v25 = vadd.f32 %v587_v24, %v564_v23 }
 0x108   : > { %v673_v26 = vmul.f32 %v669_v12, %v588_v25 }
 0x10a   : > { %784 = vmatmul.f32.gmra.mxu1 %v673_v26  ;;  %830 = vmatmul.f32.gmra.mxu3 %v673_v26 }
 0x178   : > { %v759_v27 = vpop.f32.mrf.mxu0 }
 0x17e   : > { %v805_v32 = vpop.f32.mrf.mxu2 }
 0x17f   : > { %v782_v29 = vpop.f32.mrf.mxu1 }
 0x180   : > { %v783_v30 = vadd.f32 %v782_v29, %v759_v27  ;;  %v762_v36 = vpop.f32.mrf.mxu0 }
 0x182   : > { %v834_v31 = vadd.f32 %v783_v30, %v674_v28 }
 0x184   : > { %838 = vst [vmem:[#allocation2 + $0x10] sm:$0xff] %v834_v31 }
 0x185   : > { %v828_v34 = vpop.f32.mrf.mxu3 }
 0x186   : > { %v829_v35 = vadd.f32 %v828_v34, %v805_v32  ;;  %v808_v41 = vpop.f32.mrf.mxu2 }
 0x187   : > { %v785_v38 = vpop.f32.mrf.mxu1 }
 0x188   : > { %v835_v22 = vadd.f32 %v829_v35, %v675_v33  ;;  %v786_v39 = vadd.f32 %v785_v38, %v762_v36 }
 0x18a   : > { %839 = vst [vmem:[#allocation2] sm:$0xff] %v835_v22  ;;  %v836_v40 = vadd.f32 %v786_v39, %v676_v37 }
 0x18c   : > { %840 = vst [vmem:[#allocation2 + $0x18] sm:$0xff] %v836_v40 }
 0x18d   : > { %v831_v43 = vpop.f32.mrf.mxu3 }
 0x18e   : > { %v832_v44 = vadd.f32 %v831_v43, %v808_v41  ;;  %845 = sbr.rel (%p984_p2) target bundleno = 411 (0x19b), region = 52 }
 0x190   : > { %v837_v45 = vadd.f32 %v832_v44, %v677_v42 }
 0x192   : > { %841 = vst [vmem:[#allocation2 + $0x8] sm:$0xff] %v837_v45 }
 0x193   : > { %v846_v46 = vld [vmem:[#allocation2 + $0x10] sm:$0xff]  ;;  %v847_v47 = vld [vmem:[#allocation2] sm:$0xff]  ;;  %v848_v49 = vld [vmem:[#allocation2 + $0x18] sm:$0xff] }
 0x194   : > { %850 = vst [vmem:[#allocation9] sm:$0xff] %v846_v46 }
 0x195   : > { %851 = vst [vmem:[#allocation9 + $0x8] sm:$0xff] %v847_v47 }
 0x196   : > { %852 = vst [vmem:[#allocation9 + $0x10] sm:$0xff] %v848_v49 }
 0x199   : > { %v849_v50 = vld [vmem:[#allocation2 + $0x8] sm:$0xff] }
 0x19a   : > { %853 = vst [vmem:[#allocation9 + $0x18] sm:$0xff] %v849_v50 }
 0x19b PF: > { %p1018_p3 = scmp.eq.s32.totalorder %s1369_s11, 1  ;;  %s865_s27 = sshll.u32 %s1682_s3, 4  ;;  %s866_s27 = int_to_ptr.hbm [resolvable:$true] %s865_s27 }
 0x19c   : > { %s1279_s28 = smov [#allocation9]   ;;  %s1280_s15 = smov 256  }
 0x19d   : > { %s863_s29 = sshll.u32 %s1279_s28, 4  ;;  %s1281_s30 = smov 16   ;;  %s864_s29 = int_to_ptr.vmem [resolvable:$true] %s863_s29 }
 0x19e   : > { %1001 = dma.vmem_to_hbm [thread:$0]  (%p1018_p3), %s864_s29, 512, %s866_s27, [#allocation5], %s1280_s15, %s1280_s15, %s1281_s30  }
 0x19f   : > { %1245 = dma.done.wait (%p1018_p3), [#allocation5], 512  }
 0x1a0   : > { %1247 = vsyncadd (%p1018_p3), [#allocation5], 4294966784 }
 0x1a1 PF: > { %s18_s17 = sadd.s32 1, %s1270_s17   ;;  %s1689_s12 = smov %s1254_s13 }
 0x1a2   : > { %p15_p4 = scmp.ge.s32.totalorder %s18_s17, 4   ;;  %s1690_s13 = smov %s1258_s14 }
 0x1a3   : > { %s1691_s14 = smov %s1350_s25  ;;  %s1692_s15 = smov %s1266_s16 }
 0x1a4   : > { %s1693_s16 = smov %s1695_s18  ;;  %17 = sbr.rel (!%p15_p4) target bundleno = 6 (0x6), region = 95 }
 0x1a9   :  { %882 = vsyncpa [#allocation4], 1 }
 0x1aa   :  { %884 = vsyncpa [#allocation4 + $0x1], 1 }
 0x1ab   :  { %885 = vsyncpa [#allocation7], 1 }
 0x1ac   :  { %887 = vsyncpa [#allocation7 + $0x1], 1 }
 0x1ad   :  { %888 = vsyncpa [#allocation5], 1 }
 0x1ae   :  { %890 = vsyncpa [#allocation5 + $0x1], 1 }

</bundles_post_ra>
